<compile_context>
chip_gen: v6e
topology: v6e:2x2x1
jax: 0.10.0
libtpu: 0.0.40
codegen_flags: <defaults>
</compile_context>

<pallas_src>
import functools

import jax
import jax.numpy as jnp
import numpy as np
from jax.experimental import pallas as pl
from jax.experimental.pallas import tpu as pltpu


def mlp_kernel(*refs, n_layers, skips, d_out, bf16_dot):
    """Whole-MLP fused kernel for one lane-dense batch tile.

    refs = (x_ref, <per-layer weight/bias refs...>, out_ref)
    Skip layers contribute three refs (Wx, Wh, b); others two (W, b).
    """
    x_ref = refs[0]
    out_ref = refs[-1]
    param_refs = refs[1:-1]
    n_lin = n_layers + 1

    dot_dt = jnp.bfloat16 if bf16_dot else jnp.float32
    prec = None if bf16_dot else jax.lax.Precision.HIGHEST

    x_f32 = x_ref[...].astype(jnp.float32)        # [d_in, tile_n]  f32 carry
    x_dot = x_f32.astype(dot_dt)                  # stationary skip input
    h = x_f32
    p = 0
    for i in range(n_lin):
        h_dot = h.astype(dot_dt)                  # only the dot input drops
        if i in skips:
            # torch.cat([x, h]) @ W.T  ==  Wx @ x + Wh @ h  (split in wrapper)
            wx = param_refs[p][...].astype(dot_dt)       # [d_next, d_in]
            wh = param_refs[p + 1][...].astype(dot_dt)   # [d_next, d_prev]
            b = param_refs[p + 2][...].astype(jnp.float32)  # [d_next, 1]
            p += 3
            h = (jnp.dot(wx, x_dot, preferred_element_type=jnp.float32,
                         precision=prec)
                 + jnp.dot(wh, h_dot, preferred_element_type=jnp.float32,
                           precision=prec)
                 + b)
        else:
            w = param_refs[p][...].astype(dot_dt)        # [d_next, d_prev]
            b = param_refs[p + 1][...].astype(jnp.float32)  # [d_next, 1]
            p += 2
            h = jnp.dot(w, h_dot, preferred_element_type=jnp.float32,
                        precision=prec) + b
        if i < n_lin - 1:
            h = jnp.maximum(h, 0.0)               # F.relu (f32, VALU slack)
    if d_out in (3, 4):
        h = jax.nn.sigmoid(h)                     # torch.sigmoid head (EUP)
    out_ref[...] = h.astype(out_ref.dtype)


def mlp_forward(x, params, *, skips, d_in, d_out, n_layers, tile_n=8192,
                bf16_dot=True):
    """x: [N, d_in].  params: list of (W[out,in], b[out]) in PyTorch layout.

    Storage dtype of x / params may be float32 or bfloat16; the dot inputs are
    cast to bf16 when bf16_dot=True (default, MXU-efficient) while all
    accumulation and elementwise math stays f32.  bf16_dot=False pins
    precision=HIGHEST for an exact-f32 matmul path.
    """
    N = x.shape[0]
    skips = tuple(skips)

    # --- tile / grid selection --------------------------------------------
    # 128-lane groups needed to cover N.
    groups = pl.cdiv(N, 128)
    tile_groups = max(1, min(int(tile_n) // 128, groups))
    if groups >= 2:
        # Guarantee >=2 grid steps so both v7x TensorCores are used.
        tile_groups = min(tile_groups, max(1, groups // 2))
    steps = pl.cdiv(groups, tile_groups)
    if steps >= 2 and steps % 2 == 1:
        steps += 1        # even step count -> balanced across the 2 v7x TCs
    tile_n = tile_groups * 128
    n_pad = steps * tile_n

    x_t = jnp.transpose(x)                        # [d_in, N]  lane-dense layout
    if n_pad != N:
        # Padded columns are zeros and sliced off below; their values never
        # escape.  TODO(synk): callers with x already in [d_in, N] layout can
        # skip this transpose+pad HBM round trip.
        x_t = jnp.pad(x_t, ((0, 0), (0, n_pad - N)))

    # Flatten params; split the skip-layer weight at the wrapper so the kernel
    # never slices at an unaligned sublane offset.
    flat_params, param_specs = [], []
    flops = 0
    max_width = d_out
    for i, (w, b) in enumerate(params):
        d_next, fan_in = w.shape
        max_width = max(max_width, d_next)
        b2 = b.reshape(d_next, 1)
        ws = [w[:, :d_in], w[:, d_in:]] if i in skips else [w]
        for wi in ws:
            flat_params.append(wi)
            param_specs.append(pl.BlockSpec(wi.shape, lambda g: (0, 0)))
        flat_params.append(b2)
        param_specs.append(pl.BlockSpec(b2.shape, lambda g: (0, 0)))
        flops += 2 * fan_in * d_next * n_pad + d_next * n_pad

    cost = pl.CostEstimate(
        flops=int(flops),
        transcendentals=int(d_out * n_pad if d_out in (3, 4) else 0),
        bytes_accessed=int(
            x_t.size * x_t.dtype.itemsize
            + n_pad * d_out * x.dtype.itemsize
            + sum(p.size * p.dtype.itemsize for p in flat_params)),
    )

    # VMEM sanity: double-buffered x/out blocks + f32 working set + params.
    # Must stay under the scoped cap (and well under v7x's 64 MiB physical).
    vmem_limit = 32 * 1024 * 1024
    vmem_est = (2 * (d_in + d_out) * 4 * tile_n          # pipelined blocks
                + 2 * max_width * 4 * tile_n             # h / dot intermediates
                + sum(p.size * 4 for p in flat_params))
    assert vmem_est <= vmem_limit, (vmem_est, vmem_limit)

    grid = (n_pad // tile_n,)
    out_t = pl.pallas_call(
        functools.partial(mlp_kernel, n_layers=n_layers, skips=skips,
                          d_out=d_out, bf16_dot=bf16_dot),
        out_shape=jax.ShapeDtypeStruct((d_out, n_pad), x.dtype),
        grid=grid,
        in_specs=[pl.BlockSpec((d_in, tile_n), lambda g: (0, g))] + param_specs,
        out_specs=pl.BlockSpec((d_out, tile_n), lambda g: (0, g)),
        compiler_params=pltpu.CompilerParams(
            dimension_semantics=("parallel",),
            # 32 MiB scoped VMEM is safe on all generations (v7x has only
            # 64 MiB physical -- do not blindly raise this on v7x).
            vmem_limit_bytes=vmem_limit,
        ),
        cost_estimate=cost,
    )(x_t, *flat_params)

    return jnp.transpose(out_t[:, :N])            # back to [N, d_out]


def init_mlp_params(key, d_in, d_out, d_hidden, n_layers, skips):
    """Deterministic init mimicking nn.Linear (uniform +/- 1/sqrt(fan_in)).

    Returns PyTorch-layout params: W [out, in], b [out].
    """
    dims = [d_in] + [d_hidden] * n_layers + [d_out]
    params = []
    for i in range(n_layers + 1):
        fan_in = dims[i] + d_in if i in skips else dims[i]
        fan_out = dims[i + 1]
        key, kw, kb = jax.random.split(key, 3)
        bound = 1.0 / np.sqrt(fan_in)
        w = jax.random.uniform(kw, (fan_out, fan_in), jnp.float32, -bound, bound)
        b = jax.random.uniform(kb, (fan_out,), jnp.float32, -bound, bound)
        params.append((w, b))
    return params


def mlp_reference(x, params, *, skips, d_in, d_out, n_layers):
    """Plain-JAX reference matching the PyTorch forward (f32 math)."""
    x = x.astype(jnp.float32)
    h = x
    for i, (w, b) in enumerate(params):
        w = w.astype(jnp.float32)
        b = b.astype(jnp.float32)
        if i in skips:
            h = jnp.concatenate([x, h], axis=-1)
        h = h @ w.T + b
        if i < len(params) - 1:
            h = jnp.maximum(h, 0.0)
    if d_out in (3, 4):
        h = jax.nn.sigmoid(h)
    return h


if __name__ == "__main__":
    d_in, d_out, d_hidden, n_layers = 3, 4, 32, 4
    skips = [2]
    N = 500  # deliberately not tile-aligned -> exercises pad + slice path

    key = jax.random.PRNGKey(0)
    key, kx = jax.random.split(key)
    x = jax.random.normal(kx, (N, d_in), dtype=jnp.float32)
    params = init_mlp_params(key, d_in, d_out, d_hidden, n_layers, skips)
    ref = mlp_reference(x, params, skips=skips, d_in=d_in, d_out=d_out,
                        n_layers=n_layers)

    # 1) Default perf path: bf16 MXU operands, f32 accumulate/elementwise.
    #    Loosened tolerance vs the f32 reference (outputs are sigmoid in
    #    (0,1); 5 layers of bf16 operand rounding stays well inside 2e-2).
    out = mlp_forward(x, params, skips=skips, d_in=d_in, d_out=d_out,
                      n_layers=n_layers)
    out = jax.block_until_ready(out)
    assert out.shape == (N, d_out)
    np.testing.assert_allclose(np.asarray(out, np.float32), np.asarray(ref),
                               rtol=2e-2, atol=2e-2)

    # 2) Exact-f32 path: bf16_dot=False pins precision=HIGHEST so the result
    #    matches the f32 reference tightly on every TPU generation.
    out_f32 = mlp_forward(x, params, skips=skips, d_in=d_in, d_out=d_out,
                          n_layers=n_layers, bf16_dot=False)
    out_f32 = jax.block_until_ready(out_f32)
    np.testing.assert_allclose(np.asarray(out_f32, np.float32),
                               np.asarray(ref), rtol=1e-5, atol=1e-5)

    # 3) bf16 storage (halves HBM bytes): kernel still accumulates in f32.
    x16 = x.astype(jnp.bfloat16)
    params16 = [(w.astype(jnp.bfloat16), b.astype(jnp.bfloat16))
                for (w, b) in params]
    out16 = mlp_forward(x16, params16, skips=skips, d_in=d_in, d_out=d_out,
                        n_layers=n_layers)
    out16 = jax.block_until_ready(out16)
    ref16 = mlp_reference(x16, params16, skips=skips, d_in=d_in, d_out=d_out,
                          n_layers=n_layers)
    np.testing.assert_allclose(np.asarray(out16, np.float32),
                               np.asarray(ref16, np.float32),
                               rtol=5e-2, atol=2e-2)

    print("KERNEL_OK")
</pallas_src>

<mosaic_0001>
module attributes {stable_mosaic.version = 11 : i64} {
  func.func @mlp_kernel(%arg0: i32, %arg1: memref<3x256xf32, #tpu.memory_space<vmem>>, %arg2: memref<32x3xf32, #tpu.memory_space<vmem>>, %arg3: memref<32x1xf32, #tpu.memory_space<vmem>>, %arg4: memref<32x32xf32, #tpu.memory_space<vmem>>, %arg5: memref<32x1xf32, #tpu.memory_space<vmem>>, %arg6: memref<32x3xf32, #tpu.memory_space<vmem>>, %arg7: memref<32x32xf32, #tpu.memory_space<vmem>>, %arg8: memref<32x1xf32, #tpu.memory_space<vmem>>, %arg9: memref<32x32xf32, #tpu.memory_space<vmem>>, %arg10: memref<32x1xf32, #tpu.memory_space<vmem>>, %arg11: memref<4x32xf32, #tpu.memory_space<vmem>>, %arg12: memref<4x1xf32, #tpu.memory_space<vmem>>, %arg13: memref<4x256xf32, #tpu.memory_space<vmem>>) attributes {dimension_semantics = [#tpu.dimension_semantics<parallel>], iteration_bounds = array<i64: 2>, scalar_prefetch = 0 : i64, scratch_operands = 0 : i64, tpu.core_type = #tpu.core_type<tc>, window_params = [{transform_indices = @transform_0, window_bounds = array<i64: 3, 256>}, {pipeline_mode = #tpu.pipeline_mode<synchronous>, transform_indices = @transform_1, window_bounds = array<i64: 32, 3>}, {pipeline_mode = #tpu.pipeline_mode<synchronous>, transform_indices = @transform_2, window_bounds = array<i64: 32, 1>}, {pipeline_mode = #tpu.pipeline_mode<synchronous>, transform_indices = @transform_3, window_bounds = array<i64: 32, 32>}, {pipeline_mode = #tpu.pipeline_mode<synchronous>, transform_indices = @transform_4, window_bounds = array<i64: 32, 1>}, {pipeline_mode = #tpu.pipeline_mode<synchronous>, transform_indices = @transform_5, window_bounds = array<i64: 32, 3>}, {pipeline_mode = #tpu.pipeline_mode<synchronous>, transform_indices = @transform_6, window_bounds = array<i64: 32, 32>}, {pipeline_mode = #tpu.pipeline_mode<synchronous>, transform_indices = @transform_7, window_bounds = array<i64: 32, 1>}, {pipeline_mode = #tpu.pipeline_mode<synchronous>, transform_indices = @transform_8, window_bounds = array<i64: 32, 32>}, {pipeline_mode = #tpu.pipeline_mode<synchronous>, transform_indices = @transform_9, window_bounds = array<i64: 32, 1>}, {pipeline_mode = #tpu.pipeline_mode<synchronous>, transform_indices = @transform_10, window_bounds = array<i64: 4, 32>}, {pipeline_mode = #tpu.pipeline_mode<synchronous>, transform_indices = @transform_11, window_bounds = array<i64: 4, 1>}, {transform_indices = @transform_12, window_bounds = array<i64: 4, 256>}]} {
    %c0 = arith.constant 0 : index
    %c0_0 = arith.constant 0 : index
    %0 = vector.load %arg1[%c0, %c0_0] : memref<3x256xf32, #tpu.memory_space<vmem>>, vector<3x256xf32>
    %1 = arith.truncf %0 : vector<3x256xf32> to vector<3x256xbf16>
    %2 = arith.truncf %0 : vector<3x256xf32> to vector<3x256xbf16>
    %c0_1 = arith.constant 0 : index
    %c0_2 = arith.constant 0 : index
    %3 = vector.load %arg2[%c0_1, %c0_2] : memref<32x3xf32, #tpu.memory_space<vmem>>, vector<32x3xf32>
    %4 = arith.truncf %3 : vector<32x3xf32> to vector<32x3xbf16>
    %c0_3 = arith.constant 0 : index
    %c0_4 = arith.constant 0 : index
    %5 = vector.load %arg3[%c0_3, %c0_4] : memref<32x1xf32, #tpu.memory_space<vmem>>, vector<32x1xf32>
    %cst = arith.constant dense<0.000000e+00> : vector<32x256xf32>
    %6 = tpu.matmul %4, %2, %cst {dimension_numbers = #tpu.dot_dimension_numbers<[1], [0], [0], [1], [0, 0, 1, 1], [], []>} : vector<32x3xbf16>, vector<3x256xbf16>, vector<32x256xf32> -> vector<32x256xf32>
    %7 = vector.broadcast %5 : vector<32x1xf32> to vector<32x256xf32>
    %8 = arith.addf %6, %7 : vector<32x256xf32>
    %cst_5 = arith.constant 0.000000e+00 : f32
    %9 = vector.broadcast %cst_5 : f32 to vector<32x256xf32>
    %10 = arith.maximumf %8, %9 : vector<32x256xf32>
    %11 = arith.truncf %10 : vector<32x256xf32> to vector<32x256xbf16>
    %c0_6 = arith.constant 0 : index
    %c0_7 = arith.constant 0 : index
    %12 = vector.load %arg4[%c0_6, %c0_7] : memref<32x32xf32, #tpu.memory_space<vmem>>, vector<32x32xf32>
    %13 = arith.truncf %12 : vector<32x32xf32> to vector<32x32xbf16>
    %c0_8 = arith.constant 0 : index
    %c0_9 = arith.constant 0 : index
    %14 = vector.load %arg5[%c0_8, %c0_9] : memref<32x1xf32, #tpu.memory_space<vmem>>, vector<32x1xf32>
    %cst_10 = arith.constant dense<0.000000e+00> : vector<32x256xf32>
    %15 = tpu.matmul %13, %11, %cst_10 {dimension_numbers = #tpu.dot_dimension_numbers<[1], [0], [0], [1], [0, 0, 1, 1], [], []>} : vector<32x32xbf16>, vector<32x256xbf16>, vector<32x256xf32> -> vector<32x256xf32>
    %16 = vector.broadcast %14 : vector<32x1xf32> to vector<32x256xf32>
    %17 = arith.addf %15, %16 : vector<32x256xf32>
    %cst_11 = arith.constant 0.000000e+00 : f32
    %18 = vector.broadcast %cst_11 : f32 to vector<32x256xf32>
    %19 = arith.maximumf %17, %18 : vector<32x256xf32>
    %20 = arith.truncf %19 : vector<32x256xf32> to vector<32x256xbf16>
    %c0_12 = arith.constant 0 : index
    %c0_13 = arith.constant 0 : index
    %21 = vector.load %arg6[%c0_12, %c0_13] : memref<32x3xf32, #tpu.memory_space<vmem>>, vector<32x3xf32>
    %22 = arith.truncf %21 : vector<32x3xf32> to vector<32x3xbf16>
    %c0_14 = arith.constant 0 : index
    %c0_15 = arith.constant 0 : index
    %23 = vector.load %arg7[%c0_14, %c0_15] : memref<32x32xf32, #tpu.memory_space<vmem>>, vector<32x32xf32>
    %24 = arith.truncf %23 : vector<32x32xf32> to vector<32x32xbf16>
    %c0_16 = arith.constant 0 : index
    %c0_17 = arith.constant 0 : index
    %25 = vector.load %arg8[%c0_16, %c0_17] : memref<32x1xf32, #tpu.memory_space<vmem>>, vector<32x1xf32>
    %cst_18 = arith.constant dense<0.000000e+00> : vector<32x256xf32>
    %26 = tpu.matmul %22, %1, %cst_18 {dimension_numbers = #tpu.dot_dimension_numbers<[1], [0], [0], [1], [0, 0, 1, 1], [], []>} : vector<32x3xbf16>, vector<3x256xbf16>, vector<32x256xf32> -> vector<32x256xf32>
    %cst_19 = arith.constant dense<0.000000e+00> : vector<32x256xf32>
    %27 = tpu.matmul %24, %20, %cst_19 {dimension_numbers = #tpu.dot_dimension_numbers<[1], [0], [0], [1], [0, 0, 1, 1], [], []>} : vector<32x32xbf16>, vector<32x256xbf16>, vector<32x256xf32> -> vector<32x256xf32>
    %28 = arith.addf %26, %27 : vector<32x256xf32>
    %29 = vector.broadcast %25 : vector<32x1xf32> to vector<32x256xf32>
    %30 = arith.addf %28, %29 : vector<32x256xf32>
    %cst_20 = arith.constant 0.000000e+00 : f32
    %31 = vector.broadcast %cst_20 : f32 to vector<32x256xf32>
    %32 = arith.maximumf %30, %31 : vector<32x256xf32>
    %33 = arith.truncf %32 : vector<32x256xf32> to vector<32x256xbf16>
    %c0_21 = arith.constant 0 : index
    %c0_22 = arith.constant 0 : index
    %34 = vector.load %arg9[%c0_21, %c0_22] : memref<32x32xf32, #tpu.memory_space<vmem>>, vector<32x32xf32>
    %35 = arith.truncf %34 : vector<32x32xf32> to vector<32x32xbf16>
    %c0_23 = arith.constant 0 : index
    %c0_24 = arith.constant 0 : index
    %36 = vector.load %arg10[%c0_23, %c0_24] : memref<32x1xf32, #tpu.memory_space<vmem>>, vector<32x1xf32>
    %cst_25 = arith.constant dense<0.000000e+00> : vector<32x256xf32>
    %37 = tpu.matmul %35, %33, %cst_25 {dimension_numbers = #tpu.dot_dimension_numbers<[1], [0], [0], [1], [0, 0, 1, 1], [], []>} : vector<32x32xbf16>, vector<32x256xbf16>, vector<32x256xf32> -> vector<32x256xf32>
    %38 = vector.broadcast %36 : vector<32x1xf32> to vector<32x256xf32>
    %39 = arith.addf %37, %38 : vector<32x256xf32>
    %cst_26 = arith.constant 0.000000e+00 : f32
    %40 = vector.broadcast %cst_26 : f32 to vector<32x256xf32>
    %41 = arith.maximumf %39, %40 : vector<32x256xf32>
    %42 = arith.truncf %41 : vector<32x256xf32> to vector<32x256xbf16>
    %c0_27 = arith.constant 0 : index
    %c0_28 = arith.constant 0 : index
    %43 = vector.load %arg11[%c0_27, %c0_28] : memref<4x32xf32, #tpu.memory_space<vmem>>, vector<4x32xf32>
    %44 = arith.truncf %43 : vector<4x32xf32> to vector<4x32xbf16>
    %c0_29 = arith.constant 0 : index
    %c0_30 = arith.constant 0 : index
    %45 = vector.load %arg12[%c0_29, %c0_30] : memref<4x1xf32, #tpu.memory_space<vmem>>, vector<4x1xf32>
    %cst_31 = arith.constant dense<0.000000e+00> : vector<4x256xf32>
    %46 = tpu.matmul %44, %42, %cst_31 {dimension_numbers = #tpu.dot_dimension_numbers<[1], [0], [0], [1], [0, 0, 1, 1], [], []>} : vector<4x32xbf16>, vector<32x256xbf16>, vector<4x256xf32> -> vector<4x256xf32>
    %47 = vector.broadcast %45 : vector<4x1xf32> to vector<4x256xf32>
    %48 = arith.addf %46, %47 : vector<4x256xf32>
    %49 = arith.negf %48 : vector<4x256xf32>
    %50 = math.exp %49 : vector<4x256xf32>
    %cst_32 = arith.constant 1.000000e+00 : f32
    %51 = vector.broadcast %cst_32 : f32 to vector<4x256xf32>
    %52 = arith.addf %51, %50 : vector<4x256xf32>
    %53 = arith.divf %51, %52 : vector<4x256xf32>
    %c0_33 = arith.constant 0 : index
    %c0_34 = arith.constant 0 : index
    %54 = vector.load %arg13[%c0_33, %c0_34] : memref<4x256xf32, #tpu.memory_space<vmem>>, vector<4x256xf32>
    tpu.vector_store %arg13[%c0_33, %c0_34], %53 {strides = array<i32>} : memref<4x256xf32, #tpu.memory_space<vmem>>, vector<4x256xf32>,
    return
  }
  func.func @transform_0(%arg0: i32) -> (i32, i32) {
    %c0_i32 = arith.constant 0 : i32
    %c0_i32_0 = arith.constant 0 : i32
    return %c0_i32, %arg0 : i32, i32
  }
  func.func @transform_1(%arg0: i32) -> (i32, i32) {
    %c0_i32 = arith.constant 0 : i32
    %c0_i32_0 = arith.constant 0 : i32
    %c0_i32_1 = arith.constant 0 : i32
    return %c0_i32, %c0_i32_0 : i32, i32
  }
  func.func @transform_2(%arg0: i32) -> (i32, i32) {
    %c0_i32 = arith.constant 0 : i32
    %c0_i32_0 = arith.constant 0 : i32
    %c0_i32_1 = arith.constant 0 : i32
    return %c0_i32, %c0_i32_0 : i32, i32
  }
  func.func @transform_3(%arg0: i32) -> (i32, i32) {
    %c0_i32 = arith.constant 0 : i32
    %c0_i32_0 = arith.constant 0 : i32
    %c0_i32_1 = arith.constant 0 : i32
    return %c0_i32, %c0_i32_0 : i32, i32
  }
  func.func @transform_4(%arg0: i32) -> (i32, i32) {
    %c0_i32 = arith.constant 0 : i32
    %c0_i32_0 = arith.constant 0 : i32
    %c0_i32_1 = arith.constant 0 : i32
    return %c0_i32, %c0_i32_0 : i32, i32
  }
  func.func @transform_5(%arg0: i32) -> (i32, i32) {
    %c0_i32 = arith.constant 0 : i32
    %c0_i32_0 = arith.constant 0 : i32
    %c0_i32_1 = arith.constant 0 : i32
    return %c0_i32, %c0_i32_0 : i32, i32
  }
  func.func @transform_6(%arg0: i32) -> (i32, i32) {
    %c0_i32 = arith.constant 0 : i32
    %c0_i32_0 = arith.constant 0 : i32
    %c0_i32_1 = arith.constant 0 : i32
    return %c0_i32, %c0_i32_0 : i32, i32
  }
  func.func @transform_7(%arg0: i32) -> (i32, i32) {
    %c0_i32 = arith.constant 0 : i32
    %c0_i32_0 = arith.constant 0 : i32
    %c0_i32_1 = arith.constant 0 : i32
    return %c0_i32, %c0_i32_0 : i32, i32
  }
  func.func @transform_8(%arg0: i32) -> (i32, i32) {
    %c0_i32 = arith.constant 0 : i32
    %c0_i32_0 = arith.constant 0 : i32
    %c0_i32_1 = arith.constant 0 : i32
    return %c0_i32, %c0_i32_0 : i32, i32
  }
  func.func @transform_9(%arg0: i32) -> (i32, i32) {
    %c0_i32 = arith.constant 0 : i32
    %c0_i32_0 = arith.constant 0 : i32
    %c0_i32_1 = arith.constant 0 : i32
    return %c0_i32, %c0_i32_0 : i32, i32
  }
  func.func @transform_10(%arg0: i32) -> (i32, i32) {
    %c0_i32 = arith.constant 0 : i32
    %c0_i32_0 = arith.constant 0 : i32
    %c0_i32_1 = arith.constant 0 : i32
    return %c0_i32, %c0_i32_0 : i32, i32
  }
  func.func @transform_11(%arg0: i32) -> (i32, i32) {
    %c0_i32 = arith.constant 0 : i32
    %c0_i32_0 = arith.constant 0 : i32
    %c0_i32_1 = arith.constant 0 : i32
    return %c0_i32, %c0_i32_0 : i32, i32
  }
  func.func @transform_12(%arg0: i32) -> (i32, i32) {
    %c0_i32 = arith.constant 0 : i32
    %c0_i32_0 = arith.constant 0 : i32
    return %c0_i32, %arg0 : i32, i32
  }
}

</mosaic_0001>

<bundles_post_ra>
// kernel: tpu_custom_call.1
= control target key start
LH: loop header
LB: loop body
LE: loop exit
PB: predicated region body
PF: predicated region fallthrough
CT: control target
= control target key end

     0   :  { %s1494_s0 = inlined_call_operand.vmem [shape: f32[3,512], index: 0, kind: input, shape index: {}]   ;;  %s1495_s1 = inlined_call_operand.vmem [shape: f32[32,3], index: 1, kind: input, shape index: {}]   ;;  %s1496_s2 = inlined_call_operand.vmem [shape: f32[32,1], index: 2, kind: input, shape index: {}]   ;;  %s1497_s3 = inlined_call_operand.vmem [shape: f32[32,32], index: 3, kind: input, shape index: {}]   ;;  %s1498_s4 = inlined_call_operand.vmem [shape: f32[32,1], index: 4, kind: input, shape index: {}]   ;;  %s1499_s5 = inlined_call_operand.vmem [shape: f32[32,3], index: 5, kind: input, shape index: {}]   ;;  %s1500_s6 = inlined_call_operand.vmem [shape: f32[32,32], index: 6, kind: input, shape index: {}]   ;;  %s1501_s7 = inlined_call_operand.vmem [shape: f32[32,1], index: 7, kind: input, shape index: {}]   ;;  %s1502_s8 = inlined_call_operand.vmem [shape: f32[32,32], index: 8, kind: input, shape index: {}]   ;;  %s1503_s9 = inlined_call_operand.vmem [shape: f32[32,1], index: 9, kind: input, shape index: {}]   ;;  %s1504_s10 = inlined_call_operand.vmem [shape: f32[4,32], index: 10, kind: input, shape index: {}]   ;;  %s1505_s11 = inlined_call_operand.vmem [shape: f32[4,1], index: 11, kind: input, shape index: {}]   ;;  %s1506_s12 = inlined_call_operand.hbm [shape: f32[4,512], index: 12, kind: output, shape index: {}]  }
   0x1   :  { %1508 = sst [smem:[#allocation7_spill]] %s1494_s0 }
   0x2   :  { %17 = vsyncpa [#allocation3], 0 }
   0x3   :  { %19 = vsyncpa [#allocation3 + $0x1], 0  ;;  %s1262_s21 = smov 0   ;;  %s1264_s22 = smov 0  }
   0x4   :  { %s1266_s23 = smov 0   ;;  %s1268_s24 = smov 0  }
   0x5 LB: > { %1509 = sst [smem:[#allocation5_spill]] %s1188_s23  ;;  %s1283_s25 = sadd.s32 4294967295, %s1192_s24   ;;  %s1192_s24 = sphi %s1268_s24, %s1518_s24   ;;  %s1188_s23 = sphi %s1266_s23, %s1515_s23   ;;  %s1184_s22 = sphi %s1264_s22, %s1517_s22   ;;  %s1180_s21 = sphi %s1262_s21, %s1516_s21  }
   0x6   : > { %s1054_s26 = sadd.s32 4294967294, %s1192_s24   ;;  %s1287_s27 = sadd.s32 1, %s1192_s24  }
   0x7   : > { %s289_s28 = sadd.s32 1, %s1188_s23  ;;  %s286_s29 = ssub.s32 %s1192_s24, %s1287_s27 }
   0x8   : > { %p299_p0 = scmp.ne.s32.totalorder %s1188_s23, %s1184_s22  ;;  %p287_p1 = scmp.eq.s32.totalorder %s286_s29, 0 }
   0x9   : > { %p300_p2 = scmp.eq.s32.totalorder %s1283_s25, 1  ;;  %p305_p3 = scmp.ne.s32.totalorder %s1184_s22, %s1180_s21 }
   0xa   : > { %p306_p4 = scmp.eq.s32.totalorder %s1054_s26, 1  ;;  %p1057_p7 = scmp.ge.s32.totalorder %s1192_s24, 1 }
   0xb   : > { %s1298_s30 = scalar_select %p287_p1, %s1188_s23, %s289_s28  }
   0xc   : > { %p1300_p5 = por %p300_p2, %p299_p0  ;;  %p1304_p6 = por %p306_p4, %p305_p3 }
   0xd   : > { %1510 = sst [smem:[#allocation6_spill]] %s1298_s30  ;;  %p366_p8 = scmp.lt.s32.totalorder %s1192_s24, 3 }
   0xf   : > { %p367_p9 = pnand %p1057_p7, %p366_p8 }
  0x10   : > { %s1059_s15 = sshll.u32 (!%p367_p9), %s1283_s25, 1  ;;  %s1513_s0 = sld [smem:[#allocation7_spill]] (!%p367_p9) }
  0x11   : > { %370 = sbr.rel (%p367_p9) target bundleno = 1168 (0x490), region = 68  ;;  %p409_p10 = scmp.lt.s32.totalorder (!%p367_p9), %s1059_s15, 3 }
  0x12   : > { %s1079_s26 = sshll.u32 (!%p367_p9), %s1283_s25, 7  ;;  %s1196_s19 = smov (!%p367_p9), [#allocation2]  }
  0x13   : > { %s993_s16 = scalar_lea.hbm (!%p367_p9), %s1506_s12, %s1079_s26 }
  0x16   : > { %v1194_v0 = vmov 0   ;;  %vm459_vm0 = vcmask 1040384   ;;  %v430_v1 = vld [vmem:[%s1496_s2 + $0x10] sm:$0xff]  ;;  %s1520_s15 = smov (!%p409_p10, %s1059_s15), 3  ;;  %v428_v2 = vld [vmem:[%s1496_s2] sm:$0xff]  ;;  %v431_v3 = vld [vmem:[%s1496_s2 + $0x18] sm:$0xff] }
  0x17   : > { %501 = vmatprep.mubr.bf16.mxu0 %v1194_v0  ;;  %1121 = vset.pattern.permute.xlu0 %v1194_v0  ;;  %s1060_s28 = sshll.u32 %s1520_s15, 2  ;;  %vm460_vm1 = vcmask 1041408   ;;  %v1195_v4 = vmov 65535   ;;  %v429_v6 = vld [vmem:[%s1496_s2 + $0x8] sm:$0xff]  ;;  %v542_v11 = vld [vmem:[%s1498_s4 + $0x10] sm:$0xff]  ;;  %v543_v12 = vld [vmem:[%s1498_s4 + $0x18] sm:$0xff] }
  0x18   : > { %1122 = vset.pattern.permute.xlu1 %v1194_v0  ;;  %603 = vmatprep.mubr.bf16.mxu1 %v1194_v0  ;;  %v461_v5 = vsel %vm459_vm0, 4294967295, %v1195_v4  ;;  %s412_s23 = scalar_lea.vmem %s1513_s0, %s1060_s28  ;;  %v422_v15 = vld [vmem:[%s1495_s1] sm:$0xff]  ;;  %v423_v16 = vld [vmem:[%s1495_s1 + $0x8] sm:$0xff]  ;;  %vm452_vm2 = vcmask 23552   ;;  %v650_v21 = vld [vmem:[%s1501_s7 + $0x10] sm:$0xff]  ;;  %vm564_vm3 = vcmask 261120  }
  0x19   : > { %444 = vperm.xlu0 %1121, %v430_v1   ;;  %434 = vperm.xlu1 %1122, %v428_v2   ;;  %v416_v7 = vld [vmem:[%s412_s23] sm:$0x77]  ;;  %v462_v9 = vsel %vm460_vm1, %v461_v5, 0  ;;  %v541_v19 = vld [vmem:[%s1498_s4 + $0x8] sm:$0xff]  ;;  %v426_v20 = vpack.c.bf16 %v423_v16, %v422_v15  ;;  %v651_v22 = vld [vmem:[%s1501_s7 + $0x18] sm:$0xff]  ;;  %s405_s15 = sand.u32 1, %s1184_s22  }
  0x1a   : > { %v418_v8 = vcombine.high %v416_v7, %v416_v7  ;;  %v420_v10 = vpack.c.bf16 %v416_v7, %v416_v7  ;;  %v540_v18 = vld [vmem:[%s1498_s4] sm:$0xff]  ;;  %v424_v23 = vld [vmem:[%s1495_s1 + $0x10] sm:$0xff]  ;;  %v425_v24 = vld [vmem:[%s1495_s1 + $0x18] sm:$0xff]  ;;  %s1058_s20 = sshll.u32 %s405_s15, 3  ;;  %s981_s17 = scalar_lea.sflag [#allocation3], %s405_s15 }
  0x1b   : > { %v648_v25 = vld [vmem:[%s1501_s7] sm:$0xff]  ;;  %v649_v26 = vld [vmem:[%s1501_s7 + $0x8] sm:$0xff]  ;;  %v427_v27 = vpack.c.bf16 %v425_v24, %v424_v23  ;;  %v818_v28 = vld [vmem:[%s1503_s9 + $0x10] sm:$0xff]  ;;  %s407_s30 = scalar_lea.vmem [#allocation2], %s1058_s20  ;;  %s1136_s0 = sshll.u32 %s1196_s19, 4  ;;  %s1137_s0 = int_to_ptr.vmem [resolvable:$false] %s1136_s0 }
  0x1c   : > { %v421_v13 = vpack.c.bf16 %v418_v8, %v418_v8  ;;  %v1336_v14 = vand.u32 %v462_v9, %v420_v10  ;;  %v819_v29 = vld [vmem:[%s1503_s9 + $0x18] sm:$0xff]  ;;  %v816_v30 = vld [vmem:[%s1503_s9] sm:$0xff]  ;;  %v817_v31 = vld [vmem:[%s1503_s9 + $0x8] sm:$0xff]  ;;  %s995_s23 = sshll.u32 %s407_s30, 4  ;;  %s1138_s25 = scalar_lea.vmem %s1137_s0, 256  ;;  %s996_s23 = int_to_ptr.vmem [resolvable:$true] %s995_s23 }
  0x1d   : > { %449 = vperm.xlu0 %1121, %v431_v3   ;;  %439 = vperm.xlu1 %1122, %v429_v6   ;;  %v913_v32 = vld [vmem:[%s1505_s11] sm:$0xf]  ;;  %v535_v2 = vld [vmem:[%s1497_s3 + $0x8] sm:$0xff]  ;;  %v536_v5 = vld [vmem:[%s1497_s3 + $0x10] sm:$0xff]  ;;  %s1132_s18 = scalar_lea.vmem %s996_s23, 128  ;;  %p1139_p0 = scmp.lt.s32.totalorder %s996_s23, %s1137_s0 }
  0x1e   : > { %v1344_v17 = vand.u32 %v462_v9, %v421_v13  ;;  %v534_v1 = vld [vmem:[%s1497_s3] sm:$0xff]  ;;  %v537_v6 = vld [vmem:[%s1497_s3 + $0x18] sm:$0xff]  ;;  %v637_v9 = vld [vmem:[%s1499_s5 + $0x8] sm:$0xff]  ;;  %p1133_p11 = scmp.ne.s32.totalorder %s996_s23, %s1132_s18  ;;  %p1140_p1 = scmp.lt.s32.totalorder %s1138_s25, %s1132_s18 }
  0x1f   : > { %v538_v4 = vpack.c.bf16 %v535_v2, %v534_v1  ;;  %v539_v7 = vpack.c.bf16 %v537_v6, %v536_v5  ;;  %v636_v8 = vld [vmem:[%s1499_s5] sm:$0xff] }
  0x20   : > { %483 = vmatprep.subr.bf16.mxu0 %v1344_v17  ;;  %v640_v10 = vpack.c.bf16 %v637_v9, %v636_v8  ;;  %p1134_p12 = pnand %p1133_p11, %p1300_p5  ;;  %p1141_p2 = por %p1140_p1, %p1139_p0 }
  0x21   : > { %556 = vperm.xlu0 %1121, %v542_v11   ;;  %561 = vperm.xlu1 %1122, %v543_v12   ;;  %v638_v11 = vld [vmem:[%s1499_s5 + $0x10] sm:$0xff]  ;;  %v639_v12 = vld [vmem:[%s1499_s5 + $0x18] sm:$0xff] }
  0x22   : > { %484 = vmatpush1.bf16.msra.mxu0 %v1336_v14  ;;  %v641_v13 = vpack.c.bf16 %v639_v12, %v638_v11  ;;  %p1135_p13 = pneg %p1134_p12 }
  0x24   : > { %p1142_p3 = pnand %p1141_p2, %p1135_p13 }
  0x25   : > { %546 = vperm.xlu0 %1121, %v540_v18   ;;  %551 = vperm.xlu1 %1122, %v541_v19  }
  0x26   : > { %1061 = vmatmul.mubr.msk.bf16.vlgmr.msra.gmra.mxu0 %vm452_vm2, %v426_v20 }
  0x27   : > { %511 = vmatprep.mubr.bf16.mxu0 %v1194_v0 }
  0x29   : > { %782 = vperm.xlu0 %1121, %v650_v21   ;;  %787 = vperm.xlu1 %1122, %v651_v22  }
  0x2d   : > { %772 = vperm.xlu0 %1121, %v648_v25   ;;  %777 = vperm.xlu1 %1122, %v649_v26  }
  0x2e   : > { %1062 = vmatmul.mubr.msk.bf16.gmra.mxu0 %vm452_vm2, %v427_v27 }
  0x2f   : > { %690 = vmatprep.mubr.bf16.mxu0 %v1194_v0 }
  0x31   : > { %832 = vperm.xlu0 %1121, %v818_v28   ;;  %837 = vperm.xlu1 %1122, %v819_v29  }
  0x35   : > { %822 = vperm.xlu0 %1121, %v816_v30   ;;  %827 = vperm.xlu1 %1122, %v817_v31  }
  0x39   : > { %916 = vperm.xlu0 %1121, %v913_v32  }
  0x94   : > { %v445_v36 = vpop.permute.xlu0 %444  ;;  %v435_v37 = vpop.permute.xlu1 %434 }
  0x98   : > { %v450_v41 = vpop.permute.xlu0 %449  ;;  %v440_v42 = vpop.permute.xlu1 %439 }
  0x9c   : > { %v557_v19 = vpop.permute.xlu0 %556 }
  0xa0   : > { %v547_v27 = vpop.permute.xlu0 %546 }
  0xa4   : > { %v783_v1 = vpop.permute.xlu0 %782 }
  0xe6   : > { %v503_v33 = vpop.f32.mrf.mxu0 }
  0xe7   : > { %v504_v56 = vadd.f32 %v503_v33, %v435_v37 }
  0xe8   : > { %v505_v34 = vpop.f32.mrf.mxu0 }
  0xe9   : > { %v506_v49 = vadd.f32 %v505_v34, %v435_v37  ;;  %v522_v63 = vmax.f32 %v504_v56, 0.0 }
  0xea   : > { %v507_v35 = vpop.f32.mrf.mxu0 }
  0xeb   : > { %v508_v51 = vadd.f32 %v507_v35, %v440_v42  ;;  %v523_v58 = vmax.f32 %v506_v49, 0.0  ;;  %v644_v49 = vld [vmem:[%s1500_s6 + $0x10] sm:$0xff] }
  0xec   : > { %v509_v38 = vpop.f32.mrf.mxu0 }
  0xed   : > { %v510_v44 = vadd.f32 %v509_v38, %v440_v42  ;;  %v524_v60 = vmax.f32 %v508_v51, 0.0 }
  0xee   : > { %v513_v39 = vpop.f32.mrf.mxu0 }
  0xef   : > { %v514_v47 = vadd.f32 %v513_v39, %v445_v36  ;;  %v525_v53 = vmax.f32 %v510_v44, 0.0  ;;  %v530_v3 = vpack.c.bf16 %v524_v60, %v522_v63 }
  0xf0   : > { %v515_v40 = vpop.f32.mrf.mxu0 }
  0xf1   : > { %v516_v45 = vadd.f32 %v515_v40, %v445_v36  ;;  %v526_v57 = vmax.f32 %v514_v47, 0.0  ;;  %v531_v62 = vpack.c.bf16 %v525_v53, %v523_v58 }
  0xf2   : > { %v517_v43 = vpop.f32.mrf.mxu0 }
  0xf3   : > { %v518_v46 = vadd.f32 %v517_v43, %v450_v41  ;;  %v527_v54 = vmax.f32 %v516_v45, 0.0  ;;  %v642_v45 = vld [vmem:[%s1500_s6] sm:$0xff] }
  0xf4   : > { %v519_v48 = vpop.f32.mrf.mxu0 }
  0xf5   : > { %v520_v50 = vadd.f32 %v519_v48, %v450_v41  ;;  %v528_v52 = vmax.f32 %v518_v46, 0.0  ;;  %v643_v46 = vld [vmem:[%s1500_s6 + $0x8] sm:$0xff] }
  0xf6   : > { %v646_v48 = vpack.c.bf16 %v643_v46, %v642_v45 }
  0xf7   : > { %v529_v55 = vmax.f32 %v520_v50, 0.0  ;;  %v532_v61 = vpack.c.bf16 %v528_v52, %v526_v57  ;;  %v645_v50 = vld [vmem:[%s1500_s6 + $0x18] sm:$0xff] }
  0xf8   : > { %v647_v51 = vpack.c.bf16 %v645_v50, %v644_v49 }
  0xf9   : > { %v533_v59 = vpack.c.bf16 %v529_v55, %v527_v54 }
  0xfb   : > { %583 = vmatprep.subr.bf16.mxu1 %v533_v59 }
  0xfc   : > { %584 = vmatpush1.bf16.msra.mxu1 %v532_v61 }
  0xfd   : > { %585 = vmatprep.subr.bf16.mxu1 %v531_v62 }
 0x100   : > { %586 = vmatpush1.bf16.msra.mxu1 %v530_v3 }
 0x101   : > { %731 = vmatprep.subr.bf16.mxu1 %v1344_v17  ;;  %v562_v17 = vpop.permute.xlu1 %561 }
 0x103   : > { %1063 = vmatmul.mubr.msk.bf16.vlgmr.msra.gmra.mxu1 %vm564_vm3, %v538_v4 }
 0x104   : > { %613 = vmatprep.mubr.bf16.mxu1 %v1194_v0  ;;  %732 = vmatpush1.bf16.msra.mxu1 %v1336_v14 }
 0x105   : > { %v552_v22 = vpop.permute.xlu1 %551 }
 0x109   : > { %v788_v62 = vpop.permute.xlu1 %787 }
 0x10b   : > { %1064 = vmatmul.mubr.msk.bf16.gmra.mxu1 %vm564_vm3, %v539_v7 }
 0x10c   : > { %749 = vmatprep.mubr.bf16.mxu1 %v1194_v0 }
 0x10d   : > { %v778_v8 = vpop.permute.xlu1 %777 }
 0x111   : > { %v838_v46 = vpop.permute.xlu1 %837 }
 0x113   : > { %1067 = vmatmul.mubr.msk.bf16.vlgmr.msra.gmra.mxu1 %vm452_vm2, %v640_v10 }
 0x114   : > { %759 = vmatprep.mubr.bf16.mxu1 %v1194_v0 }
 0x11b   : > { %1068 = vmatmul.mubr.msk.bf16.gmra.mxu1 %vm452_vm2, %v641_v13 }
 0x11c   : > { %954 = vmatprep.mubr.bf16.mxu1 %v1194_v0 }
 0x1c3   : > { %v605_v14 = vpop.f32.mrf.mxu1 }
 0x1c4   : > { %v606_v37 = vadd.f32 %v605_v14, %v547_v27 }
 0x1c5   : > { %v607_v15 = vpop.f32.mrf.mxu1 }
 0x1c6   : > { %v608_v30 = vadd.f32 %v607_v15, %v547_v27  ;;  %v624_v44 = vmax.f32 %v606_v37, 0.0  ;;  %v811_v37 = vld [vmem:[%s1502_s8 + $0x8] sm:$0xff] }
 0x1c7   : > { %v609_v16 = vpop.f32.mrf.mxu1 }
 0x1c8   : > { %v610_v32 = vadd.f32 %v609_v16, %v552_v22  ;;  %v625_v39 = vmax.f32 %v608_v30, 0.0 }
 0x1c9   : > { %v611_v18 = vpop.f32.mrf.mxu1 }
 0x1ca   : > { %v612_v24 = vadd.f32 %v611_v18, %v552_v22  ;;  %v626_v41 = vmax.f32 %v610_v32, 0.0  ;;  %v773_v18 = vpop.permute.xlu0 %772 }
 0x1cb   : > { %v615_v20 = vpop.f32.mrf.mxu1 }
 0x1cc   : > { %v616_v28 = vadd.f32 %v615_v20, %v557_v19  ;;  %v627_v34 = vmax.f32 %v612_v24, 0.0  ;;  %v632_v47 = vpack.c.bf16 %v626_v41, %v624_v44  ;;  %v813_v41 = vld [vmem:[%s1502_s8 + $0x18] sm:$0xff] }
 0x1cd   : > { %v617_v21 = vpop.f32.mrf.mxu1 }
 0x1ce   : > { %v618_v25 = vadd.f32 %v617_v21, %v557_v19  ;;  %v628_v38 = vmax.f32 %v616_v28, 0.0  ;;  %v633_v43 = vpack.c.bf16 %v627_v34, %v625_v39 }
 0x1cf   : > { %v619_v23 = vpop.f32.mrf.mxu1 }
 0x1d0   : > { %v620_v26 = vadd.f32 %v619_v23, %v562_v17  ;;  %v629_v35 = vmax.f32 %v618_v25, 0.0 }
 0x1d1   : > { %v621_v29 = vpop.f32.mrf.mxu1 }
 0x1d2   : > { %v622_v31 = vadd.f32 %v621_v29, %v562_v17  ;;  %v630_v33 = vmax.f32 %v620_v26, 0.0 }
 0x1d3   : > { %v751_v52 = vpop.f32.mrf.mxu1 }
 0x1d4   : > { %v631_v36 = vmax.f32 %v622_v31, 0.0  ;;  %v634_v42 = vpack.c.bf16 %v630_v33, %v628_v38 }
 0x1d5   : > { %v753_v53 = vpop.f32.mrf.mxu1 }
 0x1d6   : > { %v635_v40 = vpack.c.bf16 %v631_v36, %v629_v35  ;;  %v810_v36 = vld [vmem:[%s1502_s8] sm:$0xff] }
 0x1d7   : > { %v755_v54 = vpop.f32.mrf.mxu1  ;;  %v814_v39 = vpack.c.bf16 %v811_v37, %v810_v36 }
 0x1d8   : > { %670 = vmatprep.subr.bf16.mxu0 %v635_v40  ;;  %v812_v40 = vld [vmem:[%s1502_s8 + $0x10] sm:$0xff] }
 0x1d9   : > { %671 = vmatpush1.bf16.msra.mxu0 %v634_v42  ;;  %v757_v55 = vpop.f32.mrf.mxu1  ;;  %v815_v42 = vpack.c.bf16 %v813_v41, %v812_v40 }
 0x1da   : > { %672 = vmatprep.subr.bf16.mxu0 %v633_v43 }
 0x1db   : > { %v761_v58 = vpop.f32.mrf.mxu1 }
 0x1dd   : > { %673 = vmatpush1.bf16.msra.mxu0 %v632_v47  ;;  %v763_v60 = vpop.f32.mrf.mxu1 }
 0x1df   : > { %v765_v2 = vpop.f32.mrf.mxu1 }
 0x1e0   : > { %1065 = vmatmul.mubr.msk.bf16.vlgmr.msra.gmra.mxu0 %vm564_vm3, %v646_v48  ;;  %v833_v48 = vpop.permute.xlu0 %832 }
 0x1e1   : > { %700 = vmatprep.mubr.bf16.mxu0 %v1194_v0  ;;  %v767_v12 = vpop.f32.mrf.mxu1 }
 0x1e8   : > { %1066 = vmatmul.mubr.msk.bf16.gmra.mxu0 %vm564_vm3, %v647_v51 }
 0x1e9   : > { %878 = vmatprep.mubr.bf16.mxu0 %v1194_v0 }
 0x2a0   : > { %v692_v56 = vpop.f32.mrf.mxu0 }
 0x2a1   : > { %v752_v19 = vadd.f32 %v751_v52, %v692_v56 }
 0x2a2   : > { %v694_v57 = vpop.f32.mrf.mxu0 }
 0x2a3   : > { %v754_v9 = vadd.f32 %v753_v53, %v694_v57  ;;  %v790_v28 = vadd.f32 %v773_v18, %v752_v19 }
 0x2a4   : > { %v696_v59 = vpop.f32.mrf.mxu0 }
 0x2a5   : > { %v756_v11 = vadd.f32 %v755_v54, %v696_v59  ;;  %v791_v21 = vadd.f32 %v773_v18, %v754_v9  ;;  %v798_v35 = vmax.f32 %v790_v28, 0.0 }
 0x2a6   : > { %v698_v61 = vpop.f32.mrf.mxu0 }
 0x2a7   : > { %v758_v4 = vadd.f32 %v757_v55, %v698_v61  ;;  %v792_v23 = vadd.f32 %v778_v8, %v756_v11  ;;  %v799_v30 = vmax.f32 %v791_v21, 0.0  ;;  %v823_v55 = vpop.permute.xlu0 %822 }
 0x2a8   : > { %v702_v63 = vpop.f32.mrf.mxu0 }
 0x2a9   : > { %v762_v6 = vadd.f32 %v761_v58, %v702_v63  ;;  %v793_v14 = vadd.f32 %v778_v8, %v758_v4  ;;  %v800_v32 = vmax.f32 %v792_v23, 0.0 }
 0x2aa   : > { %v704_v3 = vpop.f32.mrf.mxu0 }
 0x2ab   : > { %v764_v5 = vadd.f32 %v763_v60, %v704_v3  ;;  %v794_v20 = vadd.f32 %v783_v1, %v762_v6  ;;  %v801_v25 = vmax.f32 %v793_v14, 0.0  ;;  %v806_v38 = vpack.c.bf16 %v800_v32, %v798_v35 }
 0x2ac   : > { %v706_v7 = vpop.f32.mrf.mxu0 }
 0x2ad   : > { %v766_v10 = vadd.f32 %v765_v2, %v706_v7  ;;  %v795_v15 = vadd.f32 %v783_v1, %v764_v5  ;;  %v802_v29 = vmax.f32 %v794_v20, 0.0  ;;  %v807_v34 = vpack.c.bf16 %v801_v25, %v799_v30 }
 0x2ae   : > { %v708_v13 = vpop.f32.mrf.mxu0 }
 0x2af   : > { %v796_v16 = vadd.f32 %v788_v62, %v766_v10  ;;  %v768_v17 = vadd.f32 %v767_v12, %v708_v13  ;;  %v803_v26 = vmax.f32 %v795_v15, 0.0  ;;  %v911_v10 = vld [vmem:[%s1504_s10] sm:$0xf]  ;;  %v917_v13 = vpop.permute.xlu0 %916 }
 0x2b0   : > { %v912_v12 = vpack.c.bf16 %v911_v10, %v911_v10 }
 0x2b1   : > { %v797_v22 = vadd.f32 %v788_v62, %v768_v17  ;;  %v804_v24 = vmax.f32 %v796_v16, 0.0 }
 0x2b3   : > { %v805_v27 = vmax.f32 %v797_v22, 0.0  ;;  %v808_v33 = vpack.c.bf16 %v804_v24, %v802_v29 }
 0x2b5   : > { %v809_v31 = vpack.c.bf16 %v805_v27, %v803_v26 }
 0x2b7   : > { %858 = vmatprep.subr.bf16.mxu0 %v809_v31 }
 0x2b8   : > { %859 = vmatpush1.bf16.msra.mxu0 %v808_v33 }
 0x2b9   : > { %860 = vmatprep.subr.bf16.mxu0 %v807_v34 }
 0x2bc   : > { %861 = vmatpush1.bf16.msra.mxu0 %v806_v38 }
 0x2bf   : > { %1069 = vmatmul.mubr.msk.bf16.vlgmr.msra.gmra.mxu0 %vm564_vm3, %v814_v39 }
 0x2c0   : > { %888 = vmatprep.mubr.bf16.mxu0 %v1194_v0  ;;  %v828_v0 = vpop.permute.xlu1 %827 }
 0x2c7   : > { %1070 = vmatmul.mubr.msk.bf16.gmra.mxu0 %vm564_vm3, %v815_v42 }
 0x37f   : > { %v880_v43 = vpop.f32.mrf.mxu0 }
 0x380   : > { %v881_v2 = vadd.f32 %v880_v43, %v823_v55 }
 0x381   : > { %v882_v44 = vpop.f32.mrf.mxu0 }
 0x382   : > { %v883_v58 = vadd.f32 %v882_v44, %v823_v55  ;;  %v899_v9 = vmax.f32 %v881_v2, 0.0 }
 0x383   : > { %v884_v45 = vpop.f32.mrf.mxu0 }
 0x384   : > { %v885_v60 = vadd.f32 %v884_v45, %v828_v0  ;;  %v900_v4 = vmax.f32 %v883_v58, 0.0 }
 0x385   : > { %v886_v47 = vpop.f32.mrf.mxu0 }
 0x386   : > { %v887_v52 = vadd.f32 %v886_v47, %v828_v0  ;;  %v901_v6 = vmax.f32 %v885_v60, 0.0 }
 0x387   : > { %v890_v49 = vpop.f32.mrf.mxu0 }
 0x388   : > { %v891_v56 = vadd.f32 %v890_v49, %v833_v48  ;;  %v902_v62 = vmax.f32 %v887_v52, 0.0  ;;  %v907_v11 = vpack.c.bf16 %v901_v6, %v899_v9 }
 0x389   : > { %v892_v50 = vpop.f32.mrf.mxu0 }
 0x38a   : > { %v893_v53 = vadd.f32 %v892_v50, %v833_v48  ;;  %v903_v3 = vmax.f32 %v891_v56, 0.0  ;;  %v908_v8 = vpack.c.bf16 %v902_v62, %v900_v4 }
 0x38b   : > { %v894_v51 = vpop.f32.mrf.mxu0 }
 0x38c   : > { %v895_v54 = vadd.f32 %v894_v51, %v838_v46  ;;  %v904_v63 = vmax.f32 %v893_v53, 0.0 }
 0x38d   : > { %v896_v57 = vpop.f32.mrf.mxu0 }
 0x38e   : > { %v897_v59 = vadd.f32 %v896_v57, %v838_v46  ;;  %v905_v61 = vmax.f32 %v895_v54, 0.0 }
 0x390   : > { %v906_v1 = vmax.f32 %v897_v59, 0.0  ;;  %v909_v7 = vpack.c.bf16 %v905_v61, %v903_v3 }
 0x392   : > { %v910_v5 = vpack.c.bf16 %v906_v1, %v904_v63 }
 0x394   : > { %934 = vmatprep.subr.bf16.mxu1 %v910_v5 }
 0x395   : > { %935 = vmatpush1.bf16.msra.mxu1 %v909_v7 }
 0x396   : > { %936 = vmatprep.subr.bf16.mxu1 %v908_v8 }
 0x399   : > { %937 = vmatpush1.bf16.msra.mxu1 %v907_v11 }
 0x39c   : > { %1071 = vmatmul.mubr.msk.bf16.vlgmr.msra.gmra.mxu1 %vm564_vm3, %v912_v12 }
 0x45c   : > { %v956_v14 = vpop.f32.mrf.mxu1 }
 0x45d   : > { %v957_v15 = vadd.f32 %v956_v14, %v917_v13 }
 0x45e   : > { %v958_v16 = vpop.f32.mrf.mxu1 }
 0x45f   : > { %v1072_v17 = vmul.f32 -1.442695, %v957_v15  ;;  %v959_v18 = vadd.f32 %v958_v16, %v917_v13 }
 0x460   : > { %v960_v19 = vpop.f32.mrf.mxu1 }
 0x461   : > { %1124 = vpow2.f32 %v1072_v17  ;;  %v1073_v20 = vmul.f32 -1.442695, %v959_v18 }
 0x462   : > { %v961_v21 = vpop.f32.mrf.mxu1 }
 0x463   : > { %1126 = vpow2.f32 %v1073_v20 }
 0x46e   : > { %v1125_v22 = vpop.eup %1124 }
 0x46f   : > { %v969_v23 = vadd.f32 1.0, %v1125_v22 }
 0x470   : > { %v1127_v24 = vpop.eup %1126 }
 0x471   : > { %v970_v25 = vadd.f32 1.0, %v1127_v24  ;;  %1128 = vrcp.f32 %v969_v23 }
 0x473   : > { %1130 = vrcp.f32 %v970_v25 }
 0x47e   : > { %v1129_v26 = vpop.eup %1128 }
 0x480   : > { %v1131_v27 = vpop.eup %1130 }
 0x481   : > { %v977_v28 = vcombine.low %v1129_v26, %v1131_v27 }
 0x483   : > { %979 = vst [vmem:[%s407_s30] sm:$0xff] %v977_v28 }
 0x484   : > { %1145 = shalt.err (!%p1142_p3)
}
 0x485   : > { %s1146_s20 = scalar_lea.hbm %s993_s16, 128  ;;  %s1150_s30 = scalar_lea.hbm %s1506_s12, 256 }
 0x486   : > { %p1147_p4 = scmp.ne.s32.totalorder %s993_s16, %s1146_s20  ;;  %p1151_p9 = scmp.lt.s32.totalorder %s993_s16, %s1506_s12 }
 0x487   : > { %p1152_p10 = scmp.lt.s32.totalorder %s1150_s30, %s1146_s20 }
 0x488   : > { %p1148_p7 = pnand %p1147_p4, %p1300_p5 }
 0x489   : > { %p1153_p11 = por %p1152_p10, %p1151_p9 }
 0x48a   : > { %p1149_p8 = pneg %p1148_p7 }
 0x48c   : > { %p1154_p12 = pnand %p1153_p11, %p1149_p8 }
 0x48e   : > { %1157 = shalt.err (!%p1154_p12)
}
 0x48f   : > { %1080 = dma.vmem_to_hbm [thread:$0]  (%p1300_p5), %s996_s23, 128, %s993_s16, %s981_s17  }
 0x490 PF: > { %p1086_p13 = scmp.ge.s32.totalorder %s1192_s24, 2  ;;  %s1007_s0 = sand.u32 1, %s1180_s21  }
 0x491   : > { %s1008_s18 = scalar_lea.sflag [#allocation3], %s1007_s0 }
 0x492   : > { %p1083_p0 = pnand %p1086_p13, %p1304_p6 }
 0x494   : > { %p1084_p1 = pneg %p1083_p0 }
 0x496   : > { %1175 = dma.done.wait (%p1084_p1), %s1008_s18, 128  }
 0x497   : > { %1177 = vsyncadd (%p1084_p1), %s1008_s18, 4294967168  ;;  %s1514_s19 = sld [smem:[#allocation5_spill]]  ;;  %p22_p2 = scmp.ge.s32.totalorder %s1287_s27, 4  }
 0x498   : > { %s1515_s23 = sld [smem:[#allocation6_spill]]  ;;  %s1516_s21 = smov %s1184_s22 }
 0x499   : > { %s1518_s24 = smov %s1287_s27  ;;  %24 = sbr.rel (!%p22_p2) target bundleno = 5 (0x5), region = 103 }
 0x49d   : > { %s1517_s22 = smov %s1514_s19 }
 0x49e   :  { %1013 = vsyncpa [#allocation3], 1 }
 0x49f   :  { %1015 = vsyncpa [#allocation3 + $0x1], 1 }

</bundles_post_ra>
